<compile_context>
chip_gen: v7x
topology: tpu7x:2x2x1
jax: 0.10.0
libtpu: 0.0.40
codegen_flags: <defaults>
</compile_context>

<pallas_src>
import functools

import jax
import jax.numpy as jnp
from jax import lax
from jax.experimental import pallas as pl
from jax.experimental.pallas import tpu as pltpu


def _int_pow(v, n):
    """v**n for Python int n >= 1 via exponentiation-by-squaring (log2 n muls)."""
    result = None
    while n > 0:
        if n & 1:
            result = v if result is None else result * v
        n >>= 1
        if n:
            v = v * v
    return result


def _cb_focal_kernel(t_ref, x_ref, w_ref, lcls_ref, sel_ref, selt_ref, out_ref,
                     *, gamma, rows_valid, tile_b):
    x = x_ref[...].astype(jnp.float32)     # (TB, FC) logits (cast after DMA)
    t = t_ref[...]                         # (TB, F)  int32 targets (folded)
    w_tiled = w_ref[...]                   # (1, FC)  f32, w[lane % C]
    lane_cls = lcls_ref[...]               # (1, FC)  f32, lane % C
    sel = sel_ref[...]                     # (FC, F)  0/1 lane->segment selector
    selt = selt_ref[...]                   # (F, FC)  its transpose

    TB, FC = x.shape
    F = t.shape[1]

    # ---- ragged-tail masking (no wrapper-side padding of logits) -------------
    row0 = pl.program_id(0) * tile_b
    row_ok = (row0 + lax.broadcasted_iota(jnp.int32, (TB, 1), 0)) < rows_valid
    # zero garbage rows BEFORE any transcendental so NaN/Inf cannot poison sums
    x = jnp.where(row_ok, x, 0.0)

    # ---- one-hot mask on the folded (lane-dense) layout -----------------------
    if F == 1:
        t_lane = t.astype(jnp.float32)                       # (TB, 1) broadcasts
    else:
        # broadcast each segment's target class across its C lanes with a tiny
        # MXU matmul (K = F); out-of-range targets simply never match any lane.
        t_lane = jnp.dot(t.astype(jnp.float32), selt,
                         preferred_element_type=jnp.float32)  # (TB, FC)
    mask = jnp.logical_and(jnp.abs(lane_cls - t_lane) < 0.5, row_ok)

    # ---- shared transcendentals (EUP) -----------------------------------------
    e = jnp.exp(-jnp.abs(x))               # exp(-|x|)
    log1pe = jnp.log1p(e)
    sp_negx = jnp.maximum(-x, 0.0) + log1pe    # softplus(-x), stable

    # BCE-with-logits, reduction='none':  x*(1-z) + softplus(-x)
    bce = jnp.where(mask, 0.0, x) + sp_negx

    g = float(gamma)
    if g == 0.0:
        weighted = bce
    elif g > 0.0 and g.is_integer() and g <= 16.0:
        # modulator = (1 - p_t)^gamma, p = sigmoid(x); reuses exp(-|x|) plus one
        # approx reciprocal (EUP) instead of a second exp per element.
        inv = pl.reciprocal(1.0 + e, approx=True)        # sigmoid(|x|)
        p = jnp.where(x >= 0.0, inv, 1.0 - inv)          # sigmoid(x)
        one_minus_pt = jnp.where(mask, 1.0 - p, p)
        weighted = _int_pow(one_minus_pt, int(g)) * bce
    else:
        # general gamma: exp(-g*z*x - g*softplus(-x)), exponent <= 0
        weighted = jnp.exp(-g * (jnp.where(mask, x, 0.0) + sp_negx)) * bce

    # ---- per-original-row reductions as segment sums over C-wide lane groups --
    aw = jnp.where(mask, w_tiled, 0.0)                   # class weight at target lane
    if F == 1:
        alpha_seg = jnp.sum(aw, axis=1, keepdims=True)   # (TB, 1)
        row_seg = jnp.sum(weighted, axis=1, keepdims=True)
    else:
        alpha_seg = jnp.dot(aw, sel, preferred_element_type=jnp.float32)       # (TB, F)
        row_seg = jnp.dot(weighted, sel, preferred_element_type=jnp.float32)   # (TB, F)
    num_partial = jnp.sum(alpha_seg * row_seg)

    # lane-dense single-shot partial write: exactly one unmasked f32 vreg store
    out_ref[...] = jnp.full((1, 8, 128), num_partial, dtype=jnp.float32)


def _round_up(x, m):
    return ((x + m - 1) // m) * m


def _choose_fold(B, C):
    """Largest fold factor F with F*C <= 128 that divides B (so reshape is free)."""
    if C >= 128 or B <= 0:
        return 1
    for f in range(max(1, 128 // C), 0, -1):
        if B % f == 0:
            return f
    return 1


def _choose_tile_b(rows, lanes):
    """Rows per grid step, sized from the f32-expanded tile footprint (bytes)."""
    target_bytes = 2 * 1024 * 1024                    # ~2 MiB per full-tile f32 temp
    tb = max(8, (target_bytes // (lanes * 4)) // 8 * 8)
    # prefer >= 4 grid steps so the 'parallel' axis can feed both v7x TensorCores,
    # but never shrink tiles below 512 rows (per-grid-step overhead ~0.35 us).
    quarter = _round_up(pl.cdiv(rows, 4), 8)
    if quarter >= 512:
        tb = min(tb, quarter)
    if rows <= tb:
        return max(1, rows)                           # single exact block, no padding
    return tb


def cb_focal_loss(logits, targets, samples_per_cls, no_of_classes,
                  gamma=2.0, beta=0.9999):
    """Class-balanced focal loss. logits: [B, C] (any float dtype), targets: [B] int."""
    B, C = logits.shape
    assert C == no_of_classes

    # class-balanced per-class weights (tiny parameter glue, plain JAX)
    samples = jnp.asarray(samples_per_cls, dtype=jnp.float32)
    effective_num = 1.0 - jnp.power(jnp.float32(beta), samples)
    weights = (1.0 - beta) / effective_num
    weights = (weights / jnp.sum(weights) * no_of_classes).astype(jnp.float32)  # (C,)

    targets = targets.astype(jnp.int32)

    # ---- lane folding: [B, C] -> [B/F, F*C] so small C fills the 128-lane vregs.
    # F divides B, so the reshape is a free contiguous view (no HBM copy, no pad).
    F = _choose_fold(B, C)
    FC = F * C
    B_fold = B // F
    logits_fold = logits.reshape(B_fold, FC)
    targets_fold = targets.reshape(B_fold, F)

    # tiny resident constants
    w_tiled = jnp.tile(weights, (F,)).reshape(1, FC)                   # w[lane % C]
    lane_cls = (jnp.arange(FC, dtype=jnp.int32) % C).astype(jnp.float32).reshape(1, FC)
    seg_of_lane = jnp.arange(FC, dtype=jnp.int32) // C
    sel = (seg_of_lane[:, None] == jnp.arange(F, dtype=jnp.int32)[None, :]
           ).astype(jnp.float32)                                       # (FC, F)
    selt = sel.T                                                       # (F, FC)

    tile_b = _choose_tile_b(B_fold, FC)
    num_tiles = pl.cdiv(B_fold, tile_b)

    kernel = functools.partial(_cb_focal_kernel, gamma=float(gamma),
                               rows_valid=B_fold, tile_b=tile_b)

    parts = pl.pallas_call(
        kernel,
        out_shape=jax.ShapeDtypeStruct((num_tiles, 8, 128), jnp.float32),
        grid=(num_tiles,),
        in_specs=[
            pl.BlockSpec((tile_b, F), lambda i: (i, 0)),    # folded targets
            pl.BlockSpec((tile_b, FC), lambda i: (i, 0)),   # folded logits (native dtype)
            pl.BlockSpec((1, FC), lambda i: (0, 0)),        # tiled class weights (resident)
            pl.BlockSpec((1, FC), lambda i: (0, 0)),        # lane % C               (resident)
            pl.BlockSpec((FC, F), lambda i: (0, 0)),        # lane->segment selector (resident)
            pl.BlockSpec((F, FC), lambda i: (0, 0)),        # selector transpose     (resident)
        ],
        out_specs=pl.BlockSpec((1, 8, 128), lambda i: (i, 0, 0)),
        compiler_params=pltpu.CompilerParams(
            dimension_semantics=("parallel",),              # megacore split on v7x
            vmem_limit_bytes=40 * 1024 * 1024,              # ~2 MiB tiles x ~8 f32 temps
        ),
    )(targets_fold, logits_fold, w_tiled, lane_cls, sel, selt)

    num_total = jnp.sum(parts[:, 0, 0])
    # denominator == sum(one_hot) == number of in-range targets (trivial [B] reduce).
    # Out-of-range targets contribute 0 to both sums (documented padding convention).
    den_total = jnp.sum(jnp.logical_and(targets >= 0, targets < C).astype(jnp.float32))
    return num_total / den_total


def _cb_focal_loss_ref(logits, targets, samples_per_cls, C, gamma, beta):
    """Pure-JAX reference mirroring the PyTorch module (for a sanity check)."""
    labels = jax.nn.one_hot(targets, C, dtype=jnp.float32)
    eff = 1.0 - jnp.power(jnp.float32(beta), jnp.asarray(samples_per_cls, jnp.float32))
    w = (1.0 - beta) / eff
    w = w / jnp.sum(w) * C
    alpha = (w[None, :] * labels).sum(1, keepdims=True)
    x = logits.astype(jnp.float32)
    log1pe = jnp.log1p(jnp.exp(-jnp.abs(x)))
    bce = jnp.maximum(x, 0.0) - x * labels + log1pe
    if gamma == 0.0:
        mod = jnp.ones_like(x)
    else:
        sp_negx = jnp.maximum(-x, 0.0) + log1pe
        mod = jnp.exp(-gamma * labels * x - gamma * sp_negx)
    return jnp.sum(alpha * mod * bce) / jnp.sum(labels)


if __name__ == "__main__":
    B = 64
    C = 16
    gamma = 2.0
    beta = 0.9999
    samples_per_cls = [10 + 5 * i for i in range(C)]

    key = jax.random.PRNGKey(0)
    k1, k2 = jax.random.split(key)
    logits = jax.random.normal(k1, (B, C), dtype=jnp.float32)
    targets = jax.random.randint(k2, (B,), 0, C, dtype=jnp.int32)

    loss = cb_focal_loss(logits, targets, samples_per_cls, C,
                         gamma=gamma, beta=beta)
    jax.block_until_ready(loss)

    # sanity: scalar float32, finite, matches pure-JAX reference
    assert loss.dtype == jnp.float32
    assert bool(jnp.isfinite(loss))
    ref = _cb_focal_loss_ref(logits, targets, samples_per_cls, C, gamma, beta)
    assert bool(jnp.abs(loss - ref) <= 1e-2 * jnp.abs(ref) + 1e-5), (loss, ref)

    print("KERNEL_OK")
</pallas_src>

<mosaic_0001>
module attributes {stable_mosaic.version = 11 : i64} {
  func.func @_cb_focal_kernel(%arg0: i32, %arg1: memref<8x8xi32, #tpu.memory_space<vmem>>, %arg2: memref<8x128xf32, #tpu.memory_space<vmem>>, %arg3: memref<1x128xf32, #tpu.memory_space<vmem>>, %arg4: memref<1x128xf32, #tpu.memory_space<vmem>>, %arg5: memref<128x8xf32, #tpu.memory_space<vmem>>, %arg6: memref<8x128xf32, #tpu.memory_space<vmem>>, %arg7: memref<1x8x128xf32, #tpu.memory_space<vmem>>) attributes {dimension_semantics = [#tpu.dimension_semantics<parallel>], iteration_bounds = array<i64: 1>, scalar_prefetch = 0 : i64, scratch_operands = 0 : i64, tpu.core_type = #tpu.core_type<tc>, window_params = [{transform_indices = @transform_0, window_bounds = array<i64: 8, 8>}, {transform_indices = @transform_1, window_bounds = array<i64: 8, 128>}, {pipeline_mode = #tpu.pipeline_mode<synchronous>, transform_indices = @transform_2, window_bounds = array<i64: 1, 128>}, {pipeline_mode = #tpu.pipeline_mode<synchronous>, transform_indices = @transform_3, window_bounds = array<i64: 1, 128>}, {pipeline_mode = #tpu.pipeline_mode<synchronous>, transform_indices = @transform_4, window_bounds = array<i64: 128, 8>}, {pipeline_mode = #tpu.pipeline_mode<synchronous>, transform_indices = @transform_5, window_bounds = array<i64: 8, 128>}, {transform_indices = @transform_6, window_bounds = array<i64: 1, 8, 128>}]} {
    %c0 = arith.constant 0 : index
    %c0_0 = arith.constant 0 : index
    %0 = vector.load %arg2[%c0, %c0_0] : memref<8x128xf32, #tpu.memory_space<vmem>>, vector<8x128xf32>
    %c0_1 = arith.constant 0 : index
    %c0_2 = arith.constant 0 : index
    %1 = vector.load %arg1[%c0_1, %c0_2] : memref<8x8xi32, #tpu.memory_space<vmem>>, vector<8x8xi32>
    %c0_3 = arith.constant 0 : index
    %c0_4 = arith.constant 0 : index
    %2 = vector.load %arg3[%c0_3, %c0_4] : memref<1x128xf32, #tpu.memory_space<vmem>>, vector<1x128xf32>
    %c0_5 = arith.constant 0 : index
    %c0_6 = arith.constant 0 : index
    %3 = vector.load %arg4[%c0_5, %c0_6] : memref<1x128xf32, #tpu.memory_space<vmem>>, vector<1x128xf32>
    %c0_7 = arith.constant 0 : index
    %c0_8 = arith.constant 0 : index
    %4 = vector.load %arg5[%c0_7, %c0_8] : memref<128x8xf32, #tpu.memory_space<vmem>>, vector<128x8xf32>
    %c0_9 = arith.constant 0 : index
    %c0_10 = arith.constant 0 : index
    %5 = vector.load %arg6[%c0_9, %c0_10] : memref<8x128xf32, #tpu.memory_space<vmem>>, vector<8x128xf32>
    %c8_i32 = arith.constant 8 : i32
    %6 = arith.muli %arg0, %c8_i32 : i32
    %7 = tpu.iota {dimensions = array<i32: 0>} : vector<8x1xi32>
    %8 = vector.broadcast %6 : i32 to vector<8x1xi32>
    %9 = arith.addi %8, %7 : vector<8x1xi32>
    %c8_i32_11 = arith.constant 8 : i32
    %10 = vector.broadcast %c8_i32_11 : i32 to vector<8x1xi32>
    %11 = arith.cmpi slt, %9, %10 : vector<8x1xi32>
    %cst = arith.constant 0.000000e+00 : f32
    %12 = vector.shape_cast %11 : vector<8x1xi1> to vector<8x1xi1>
    %13 = vector.broadcast %12 : vector<8x1xi1> to vector<8x128xi1>
    %14 = vector.broadcast %cst : f32 to vector<8x128xf32>
    %15 = arith.select %13, %0, %14 : vector<8x128xi1>, vector<8x128xf32>
    %16 = arith.sitofp %1 : vector<8x8xi32> to vector<8x8xf32>
    %cst_12 = arith.constant dense<0.000000e+00> : vector<8x128xf32>
    %17 = tpu.matmul %16, %5, %cst_12 {dimension_numbers = #tpu.dot_dimension_numbers<[1], [0], [0], [1], [0, 0, 1, 1], [], []>} : vector<8x8xf32>, vector<8x128xf32>, vector<8x128xf32> -> vector<8x128xf32>
    %18 = vector.broadcast %3 : vector<1x128xf32> to vector<8x128xf32>
    %19 = arith.subf %18, %17 : vector<8x128xf32>
    %20 = math.absf %19 : vector<8x128xf32>
    %cst_13 = arith.constant 5.000000e-01 : f32
    %21 = vector.broadcast %cst_13 : f32 to vector<8x128xf32>
    %22 = arith.cmpf olt, %20, %21 : vector<8x128xf32>
    %23 = vector.broadcast %11 : vector<8x1xi1> to vector<8x128xi1>
    %24 = arith.andi %22, %23 : vector<8x128xi1>
    %25 = math.absf %15 : vector<8x128xf32>
    %cst_14 = arith.constant 0.000000e+00 : f32
    %26 = vector.broadcast %cst_14 : f32 to vector<8x128xf32>
    %27 = arith.subf %26, %25 : vector<8x128xf32>
    %28 = math.exp %27 : vector<8x128xf32>
    %29 = math.log1p %28 : vector<8x128xf32>
    %cst_15 = arith.constant 0.000000e+00 : f32
    %30 = vector.broadcast %cst_15 : f32 to vector<8x128xf32>
    %31 = arith.subf %30, %15 : vector<8x128xf32>
    %cst_16 = arith.constant 0.000000e+00 : f32
    %32 = vector.broadcast %cst_16 : f32 to vector<8x128xf32>
    %33 = arith.maximumf %31, %32 : vector<8x128xf32>
    %34 = arith.addf %33, %29 : vector<8x128xf32>
    %cst_17 = arith.constant 0.000000e+00 : f32
    %35 = vector.broadcast %cst_17 : f32 to vector<8x128xf32>
    %36 = arith.select %24, %35, %15 : vector<8x128xi1>, vector<8x128xf32>
    %37 = arith.addf %36, %34 : vector<8x128xf32>
    %cst_18 = arith.constant 1.000000e+00 : f32
    %38 = vector.broadcast %cst_18 : f32 to vector<8x128xf32>
    %39 = arith.addf %38, %28 : vector<8x128xf32>
    %40 = tpu.reciprocal %39 {approx = true} : vector<8x128xf32> -> vector<8x128xf32>
    %cst_19 = arith.constant 0.000000e+00 : f32
    %41 = vector.broadcast %cst_19 : f32 to vector<8x128xf32>
    %42 = arith.cmpf oge, %15, %41 : vector<8x128xf32>
    %cst_20 = arith.constant 1.000000e+00 : f32
    %43 = vector.broadcast %cst_20 : f32 to vector<8x128xf32>
    %44 = arith.subf %43, %40 : vector<8x128xf32>
    %45 = arith.select %42, %40, %44 : vector<8x128xi1>, vector<8x128xf32>
    %cst_21 = arith.constant 1.000000e+00 : f32
    %46 = vector.broadcast %cst_21 : f32 to vector<8x128xf32>
    %47 = arith.subf %46, %45 : vector<8x128xf32>
    %48 = arith.select %24, %47, %45 : vector<8x128xi1>, vector<8x128xf32>
    %49 = arith.mulf %48, %48 : vector<8x128xf32>
    %50 = arith.mulf %49, %37 : vector<8x128xf32>
    %cst_22 = arith.constant 0.000000e+00 : f32
    %51 = vector.shape_cast %2 : vector<1x128xf32> to vector<1x128xf32>
    %52 = vector.broadcast %51 : vector<1x128xf32> to vector<8x128xf32>
    %53 = vector.broadcast %cst_22 : f32 to vector<8x128xf32>
    %54 = arith.select %24, %52, %53 : vector<8x128xi1>, vector<8x128xf32>
    %cst_23 = arith.constant dense<0.000000e+00> : vector<8x8xf32>
    %55 = tpu.matmul %54, %4, %cst_23 {dimension_numbers = #tpu.dot_dimension_numbers<[1], [0], [0], [1], [0, 0, 1, 1], [], []>} : vector<8x128xf32>, vector<128x8xf32>, vector<8x8xf32> -> vector<8x8xf32>
    %cst_24 = arith.constant dense<0.000000e+00> : vector<8x8xf32>
    %56 = tpu.matmul %50, %4, %cst_24 {dimension_numbers = #tpu.dot_dimension_numbers<[1], [0], [0], [1], [0, 0, 1, 1], [], []>} : vector<8x128xf32>, vector<128x8xf32>, vector<8x8xf32> -> vector<8x8xf32>
    %57 = arith.mulf %55, %56 : vector<8x8xf32>
    %58 = vector.shape_cast %57 : vector<8x8xf32> to vector<1x8x8xf32>
    %cst_25 = arith.constant dense<0.000000e+00> : vector<1xf32>
    %59 = vector.multi_reduction <add>, %58, %cst_25 [1, 2] : vector<1x8x8xf32> to vector<1xf32>
    %60 = vector.shape_cast %59 : vector<1xf32> to vector<1x1x1xf32>
    %61 = vector.extract %60[0, 0, 0] : f32 from vector<1x1x1xf32>
    %62 = vector.broadcast %61 : f32 to vector<1x8x128xf32>
    %c0_26 = arith.constant 0 : index
    %c0_27 = arith.constant 0 : index
    %c0_28 = arith.constant 0 : index
    %63 = vector.load %arg7[%c0_26, %c0_27, %c0_28] : memref<1x8x128xf32, #tpu.memory_space<vmem>>, vector<1x8x128xf32>
    tpu.vector_store %arg7[%c0_26, %c0_27, %c0_28], %62 {strides = array<i32>} : memref<1x8x128xf32, #tpu.memory_space<vmem>>, vector<1x8x128xf32>,
    return
  }
  func.func @transform_0(%arg0: i32) -> (i32, i32) {
    %c0_i32 = arith.constant 0 : i32
    %c0_i32_0 = arith.constant 0 : i32
    return %arg0, %c0_i32 : i32, i32
  }
  func.func @transform_1(%arg0: i32) -> (i32, i32) {
    %c0_i32 = arith.constant 0 : i32
    %c0_i32_0 = arith.constant 0 : i32
    return %arg0, %c0_i32 : i32, i32
  }
  func.func @transform_2(%arg0: i32) -> (i32, i32) {
    %c0_i32 = arith.constant 0 : i32
    %c0_i32_0 = arith.constant 0 : i32
    %c0_i32_1 = arith.constant 0 : i32
    return %c0_i32, %c0_i32_0 : i32, i32
  }
  func.func @transform_3(%arg0: i32) -> (i32, i32) {
    %c0_i32 = arith.constant 0 : i32
    %c0_i32_0 = arith.constant 0 : i32
    %c0_i32_1 = arith.constant 0 : i32
    return %c0_i32, %c0_i32_0 : i32, i32
  }
  func.func @transform_4(%arg0: i32) -> (i32, i32) {
    %c0_i32 = arith.constant 0 : i32
    %c0_i32_0 = arith.constant 0 : i32
    %c0_i32_1 = arith.constant 0 : i32
    return %c0_i32, %c0_i32_0 : i32, i32
  }
  func.func @transform_5(%arg0: i32) -> (i32, i32) {
    %c0_i32 = arith.constant 0 : i32
    %c0_i32_0 = arith.constant 0 : i32
    %c0_i32_1 = arith.constant 0 : i32
    return %c0_i32, %c0_i32_0 : i32, i32
  }
  func.func @transform_6(%arg0: i32) -> (i32, i32, i32) {
    %c0_i32 = arith.constant 0 : i32
    %c0_i32_0 = arith.constant 0 : i32
    %c0_i32_1 = arith.constant 0 : i32
    return %arg0, %c0_i32, %c0_i32_0 : i32, i32, i32
  }
}

</mosaic_0001>

<bundles_post_ra>
// kernel: tpu_custom_call.1
= control target key start
LH: loop header
LB: loop body
LE: loop exit
PB: predicated region body
PF: predicated region fallthrough
CT: control target
= control target key end

     0   :  { %vm55_vm0 = vcmask 64512   ;;  %v539_v2 = vmov 0.0   ;;  %vm540_vm1 = vmmov 0   ;;  %v541_v7 = vmov 0.0|0.0   ;;  %s658_s0 = inlined_call_operand.vmem [shape: s32[8,8], index: 0, kind: input, shape index: {}]   ;;  %s659_s1 = inlined_call_operand.vmem [shape: f32[8,128], index: 1, kind: input, shape index: {}]   ;;  %s660_s2 = inlined_call_operand.vmem [shape: f32[1,128], index: 2, kind: input, shape index: {}]   ;;  %s661_s3 = inlined_call_operand.vmem [shape: f32[1,128], index: 3, kind: input, shape index: {}]   ;;  %s662_s4 = inlined_call_operand.vmem [shape: f32[128,8], index: 4, kind: input, shape index: {}]   ;;  %s663_s5 = inlined_call_operand.vmem [shape: f32[8,128], index: 5, kind: input, shape index: {}]   ;;  %s664_s6 = inlined_call_operand.hbm [shape: f32[1,8,128], index: 6, kind: output, shape index: {}]  }
   0x1   :  { %v44_v0 = vld [vmem:[%s663_s5] sm:$0xff]  ;;  %380 = vmatprep.subr.mxu0 %v539_v2  ;;  %382 = vmatprep.mubr.msk.f32.mxu0 %vm540_vm1, %v539_v2  ;;  %v29_v5 = vld [vmem:[%s662_s4 + $0x8] sm:$0xff]  ;;  %v30_v6 = vld [vmem:[%s662_s4 + $0x10] sm:$0xff] }
   0x2   :  { %v25_v1 = vld [vmem:[%s658_s0] sm:$0xff]  ;;  %381 = vmatpush3.msra.mxu0 %v44_v0  ;;  %455 = vmatprep.subr.bf16.mxu1 %v541_v7  ;;  %v31_v9 = vld [vmem:[%s662_s4 + $0x18] sm:$0xff]  ;;  %v33_v12 = vld [vmem:[%s662_s4 + $0x28] sm:$0xff] }
   0x3   :  { %v54_v3 = vcvt.s32.f32 %v25_v1  ;;  %v28_v4 = vld [vmem:[%s662_s4] sm:$0xff]  ;;  %479 = vmatprep.subr.bf16.mxu0 %v541_v7  ;;  %v459_v10 = vpack.c.bf16 %v31_v9, %v30_v6  ;;  %417 = vmatprep.mubr.msk.f32.mxu1 %vm540_vm1, %v539_v2 }
   0x4   :  { %v456_v8 = vpack.c.bf16 %v29_v5, %v28_v4  ;;  %v32_v11 = vld [vmem:[%s662_s4 + $0x20] sm:$0xff] }
   0x5   :  { %383 = vmatmul.mubr.msk.f32.vlgmr.msra.gmra.mrb[0].mxu0 %vm55_vm0, %v54_v3 }
   0x6   :  { %457 = vmatpush3.bf16.msra.mxu1 %v456_v8  ;;  %481 = vmatpush3.bf16.msra.mxu0 %v456_v8 }
   0x7   :  { %458 = vmatprep.subr.bf16.mxu1 %v541_v7  ;;  %482 = vmatprep.subr.bf16.mxu0 %v541_v7 }
   0x8   :  { %452 = vmatprep.mubr.msk.f32.mxu0 %vm540_vm1, %v539_v2 }
   0x9   :  { %11 = vsyncpa [#allocation3], 0  ;;  %v462_v13 = vpack.c.bf16 %v33_v12, %v32_v11  ;;  %v34_v14 = vld [vmem:[%s662_s4 + $0x30] sm:$0xff]  ;;  %v35_v15 = vld [vmem:[%s662_s4 + $0x38] sm:$0xff] }
   0xa   :  { %460 = vmatpush3.bf16.msra.mxu1 %v459_v10  ;;  %484 = vmatpush3.bf16.msra.mxu0 %v459_v10  ;;  %v465_v16 = vpack.c.bf16 %v35_v15, %v34_v14  ;;  %v36_v17 = vld [vmem:[%s662_s4 + $0x40] sm:$0xff]  ;;  %v37_v18 = vld [vmem:[%s662_s4 + $0x48] sm:$0xff]  ;;  %v38_v20 = vld [vmem:[%s662_s4 + $0x50] sm:$0xff] }
   0xb   :  { %461 = vmatprep.subr.bf16.mxu1 %v541_v7  ;;  %485 = vmatprep.subr.bf16.mxu0 %v541_v7  ;;  %v468_v19 = vpack.c.bf16 %v37_v18, %v36_v17  ;;  %v39_v21 = vld [vmem:[%s662_s4 + $0x58] sm:$0xff]  ;;  %v40_v23 = vld [vmem:[%s662_s4 + $0x60] sm:$0xff]  ;;  %v41_v24 = vld [vmem:[%s662_s4 + $0x68] sm:$0xff] }
   0xc   :  { %v471_v22 = vpack.c.bf16 %v39_v21, %v38_v20  ;;  %v474_v25 = vpack.c.bf16 %v41_v24, %v40_v23  ;;  %v42_v26 = vld [vmem:[%s662_s4 + $0x70] sm:$0xff]  ;;  %v43_v27 = vld [vmem:[%s662_s4 + $0x78] sm:$0xff]  ;;  %v24_v29 = vld [vmem:[%s659_s1] sm:$0xff] }
   0xd   :  { %v477_v28 = vpack.c.bf16 %v43_v27, %v42_v26  ;;  %v139_v30 = vand.u32 2147483647, %v24_v29  ;;  %v152_v40 = vsub.f32 0.0, %v24_v29  ;;  %vm159_vm2 = vcmp.ge.f32.partialorder %v24_v29, 0.0  ;;  %v341_v44 = vld [vmem:[%s661_s3] ss:$0 sm:$0xff] }
   0xe   :  { %463 = vmatpush3.bf16.msra.mxu1 %v462_v13  ;;  %487 = vmatpush3.bf16.msra.mxu0 %v462_v13  ;;  %v342_v54 = vld [vmem:[%s660_s2] ss:$0 sm:$0xff]  ;;  %s542_s2 = smov [#allocation2]  }
   0xf   :  { %464 = vmatprep.subr.bf16.mxu1 %v541_v7  ;;  %488 = vmatprep.subr.bf16.mxu0 %v541_v7  ;;  %v140_v31 = vsub.f32 0.0, %v139_v30  ;;  %v153_v45 = vmax.f32 %v152_v40, 0.0  ;;  %s332_s3 = sshll.u32 %s542_s2, 4  ;;  %s333_s3 = int_to_ptr.vmem [resolvable:$true] %s332_s3 }
  0x10   :  { %s515_s10 = scalar_lea.vmem %s333_s3, 128  ;;  %p520_p1 = scmp.lt.s32.totalorder %s333_s3, %s333_s3 }
  0x11   :  { %v141_v32 = vmul.f32 1.442695, %v140_v31  ;;  %p516_p0 = scmp.ne.s32.totalorder %s333_s3, %s515_s10  ;;  %p521_p2 = scmp.lt.s32.totalorder %s515_s10, %s515_s10 }
  0x12   :  { %466 = vmatpush3.bf16.msra.mxu1 %v465_v16  ;;  %490 = vmatpush3.bf16.msra.mxu0 %v465_v16 }
  0x13   :  { %467 = vmatprep.subr.bf16.mxu1 %v541_v7  ;;  %491 = vmatprep.subr.bf16.mxu0 %v541_v7  ;;  %509 = vpow2.f32 %v141_v32  ;;  %p522_p3 = por %p521_p2, %p520_p1 }
  0x15   :  { %p523_p4 = pnand %p522_p3, %p516_p0 }
  0x16   :  { %469 = vmatpush3.bf16.msra.mxu1 %v468_v19  ;;  %493 = vmatpush3.bf16.msra.mxu0 %v468_v19 }
  0x17   :  { %470 = vmatprep.subr.bf16.mxu1 %v541_v7  ;;  %494 = vmatprep.subr.bf16.mxu0 %v541_v7 }
  0x1a   :  { %472 = vmatpush3.bf16.msra.mxu1 %v471_v22  ;;  %496 = vmatpush3.bf16.msra.mxu0 %v471_v22 }
  0x1b   :  { %473 = vmatprep.subr.bf16.mxu1 %v541_v7  ;;  %497 = vmatprep.subr.bf16.mxu0 %v541_v7 }
  0x1d   :  { %v510_v33 = vpop.eup %509 }
  0x1e   :  { %475 = vmatpush3.bf16.msra.mxu1 %v474_v25  ;;  %499 = vmatpush3.bf16.msra.mxu0 %v474_v25  ;;  %v143_v34 = vadd.f32 1.0, %v510_v33  ;;  %v146_v35 = vmul.f32 -0.5, %v510_v33  ;;  %v149_v39 = vand.u32 2147483647, %v510_v33 }
  0x1f   :  { %476 = vmatprep.subr.bf16.mxu1 %v541_v7  ;;  %500 = vmatprep.subr.bf16.mxu0 %v541_v7 }
  0x20   :  { %511 = vrcp.f32 %v143_v34  ;;  %v147_v37 = vadd.f32 1.0, %v146_v35  ;;  %vm150_vm3 = vcmp.lt.f32.partialorder %v149_v39, 0.0004427343 }
  0x21   :  { %513 = vlog2.f32 %v143_v34 }
  0x22   :  { %478 = vmatpush3.bf16.msra.mxu1 %v477_v28  ;;  %502 = vmatpush3.bf16.msra.mxu0 %v477_v28  ;;  %v148_v43 = vmul.f32 %v510_v33, %v147_v37 }
  0x2a   :  { %v512_v36 = vpop.eup %511 }
  0x2b   :  { %v514_v38 = vpop.eup %513  ;;  %v160_v41 = vsub.f32 1.0, %v512_v36 }
  0x2c   :  { %v145_v42 = vmul.f32 0.6931472, %v514_v38 }
  0x2d   :  { %v161_v46 = vsel %vm159_vm2, %v512_v36, %v160_v41 }
  0x2e   :  { %v151_v48 = vsel %vm150_vm3, %v148_v43, %v145_v42  ;;  %v162_v51 = vsub.f32 1.0, %v161_v46 }
  0x2f   :  { %v154_v53 = vadd.f32 %v153_v45, %v151_v48 }
  0xd8   :  { %v125_v47 = vpop.f32.mrb[0].mxu0 }
  0xd9   :  { %v135_v49 = vsub.f32 %v341_v44, %v125_v47  ;;  %v384_v50 = vpop.f32.mrb[1].mxu0 }
  0xdb   :  { %v136_v52 = vand.u32 2147483647, %v135_v49 }
  0xdd   :  { %vm137_vm4 = vcmp.lt.f32.partialorder %v136_v52, 0.5 }
  0xde   :  { %v155_v55 = vsel %vm137_vm4, 0.0, %v24_v29  ;;  %v163_v56 = vsel %vm137_vm4, %v162_v51, %v161_v46  ;;  %418 = vmatmul.mubr.msk.f32.vlgmr.msra.gmra.mrb[0].mxu1 %vm137_vm4, %v342_v54 }
  0xdf   :  { %v156_v57 = vadd.f32 %v155_v55, %v154_v53  ;;  %v164_v58 = vmul.f32 %v163_v56, %v163_v56 }
  0xe1   :  { %v165_v59 = vmul.f32 %v164_v58, %v156_v57 }
  0xe3   :  { %453 = vmatmul.mubr.f32.vlgmr.msra.gmra.mrb[2].mxu0 %v165_v59 }
 0x1b1   :  { %v239_v60 = vpop.f32.mrb[0].mxu1 }
 0x1b2   :  { %v419_v61 = vpop.f32.mrb[1].mxu1 }
 0x1b6   :  { %v309_v62 = vpop.f32.mrb[2].mxu0 }
 0x1b7   :  { %v313_v63 = vmul.f32 %v309_v62, %v239_v60  ;;  %v454_v0 = vpop.f32.mrb[3].mxu0 }
 0x1b9   :  { %v314_v1 = vsel %vm55_vm0, %v313_v63, 0.0 }
 0x1ba   :  { %315 = vadd.xlane.f32.xlu0 %v314_v1 }
 0x247   :  { %v316_v2 = vpop.xlane.xlu0 %315 }
 0x248   :  { %v317_v3 = vrot.slane %v316_v2, 4 }
 0x24a   :  { %v318_v4 = vadd.f32 %v317_v3, %v316_v2 }
 0x24c   :  { %v319_v5 = vrot.slane %v318_v4, 2 }
 0x24e   :  { %v320_v6 = vadd.f32 %v319_v5, %v318_v4 }
 0x250   :  { %v321_v7 = vrot.slane %v320_v6, 1 }
 0x252   :  { %v322_v8 = vadd.f32 %v321_v7, %v320_v6 }
 0x254   :  { %503 = vpush %v322_v8 }
 0x285   :  { %s504_s9 = spop %503 }
 0x286   :  { %v324_v9 = vstv %s504_s9 }
 0x287   :  { %325 = vst [vmem:[#allocation2] sm:$0xff] %v324_v9 }
 0x288   :  { %526 = shalt.err (!%p523_p4)
}
 0x289   :  { %s527_s13 = scalar_lea.hbm %s664_s6, 128 }
 0x28a   :  { %p528_p5 = scmp.ne.s32.totalorder %s664_s6, %s527_s13  ;;  %p531_p6 = scmp.lt.u32.totalorder %s527_s13, %s664_s6 }
 0x28c   :  { %p533_p7 = pnand %p531_p6, %p528_p5 }
 0x28e   :  { %536 = shalt.err (!%p533_p7)
}
 0x28f   :  { %335 = dma.vmem_to_hbm [thread:$0]  %s333_s3, 128, %s664_s6, [#allocation3]  }
 0x290   :  { %537 = dma.done.wait [#allocation3], 128  }
 0x291   :  { %538 = vsyncadd [#allocation3], 4294967168 }
 0x292   :  { %339 = vsyncpa [#allocation3], 1 }

</bundles_post_ra>
